<compile_context>
chip_gen: v6e
topology: v6e:2x2x1
jax: 0.10.0
libtpu: 0.0.40
codegen_flags: <defaults>
</compile_context>

<pallas_src>
import functools

import jax
import jax.numpy as jnp
from jax.experimental import pallas as pl
from jax.experimental.pallas import tpu as pltpu


def _cdiv(a, b):
    return (a + b - 1) // b


def _round_up(a, b):
    return _cdiv(a, b) * b


def _conv_relu_kernel(w_ref, taps_ref, o_ref):
    """One (batch row, T tile) of Conv1d(bias=False) + ReLU.

    w_ref:    (N, R)      flattened conv weight, R = in_channels * K (VMEM resident)
    taps_ref: (1, R, Tt)  tap views: taps[j, t] = x[c, t*stride + k] with j = c*K + k
    o_ref:    (1, N, Tt)  output tile in PyTorch [B, N, T] layout, Tt lane-dense
    """
    r = w_ref.shape[1]
    w = w_ref[...].astype(jnp.float32)                                # (N, R), tiny
    # R is tiny (e.g. 4): fully unrolled VPU broadcast multiply-adds; MXU not needed.
    acc = w[:, 0:1] * taps_ref[0, 0:1, :].astype(jnp.float32)         # (N,1)*(1,Tt)
    for j in range(1, r):
        acc = acc + w[:, j:j + 1] * taps_ref[0, j:j + 1, :].astype(jnp.float32)
    o_ref[0] = jnp.maximum(acc, 0.0).astype(o_ref.dtype)


def encoder_forward(x, weight, kernel_size, stride, *, t_tile=None, out_dtype=None):
    """Pallas equivalent of Encoder.forward (Conv1d(bias=False) + ReLU).

    x:      [B, L] (in_channels == 1) or [B, C, L]
    weight: [N, C, K]  (PyTorch Conv1d weight layout)
    returns [B, N, T_out] with T_out = (L - K) // stride + 1
    """
    N, Cin, K = weight.shape
    assert K == kernel_size
    if x.ndim == 2:
        assert Cin == 1, "2-D input implies in_channels == 1 (as in the PyTorch module)"
        x3 = x[:, None, :]
    else:
        x3 = x
    B, C, L = x3.shape
    assert C == Cin
    assert L >= K
    T_out = (L - K) // stride + 1
    out_dtype = x.dtype if out_dtype is None else out_dtype

    # --- T tiling: lane-dense tiles sized so one f32 output tile is ~2 MiB ---
    if t_tile is None:
        tile_budget = 2 * 1024 * 1024                       # bytes per output tile
        t_tile = (tile_budget // (N * 4)) // 128 * 128
        t_tile = max(128, min(8192, t_tile))
    else:
        t_tile = max(128, _round_up(t_tile, 128))
    num_t = _cdiv(T_out, t_tile)
    Tt = _round_up(_cdiv(T_out, num_t), 128)                # re-balanced, multiple of 128
    T_in_pad = num_t * Tt                                   # taps padded; output is NOT

    # --- build R = C*K strided tap views: taps[b, c*K + k, t] = x[b, c, t*stride + k] ---
    L_need = (T_in_pad - 1) * stride + K
    if L_need > L:
        x3 = jnp.pad(x3, ((0, 0), (0, 0), (0, L_need - L)))
    taps = jnp.stack(
        [x3[:, c, k:k + stride * (T_in_pad - 1) + 1:stride]
         for c in range(C) for k in range(K)],
        axis=1,
    )  # (B, R, T_in_pad), lane-dense along T, all tiles in-bounds
    R = C * K
    w2 = weight.reshape(N, R)

    return pl.pallas_call(
        _conv_relu_kernel,
        out_shape=jax.ShapeDtypeStruct((B, N, T_out), out_dtype),
        grid_spec=pltpu.PrefetchScalarGridSpec(
            num_scalar_prefetch=0,
            grid=(B, num_t),
            in_specs=[
                pl.BlockSpec((N, R), lambda b, i: (0, 0)),          # weight (resident)
                pl.BlockSpec((1, R, Tt), lambda b, i: (b, 0, i)),   # tap tile
            ],
            out_specs=pl.BlockSpec((1, N, Tt), lambda b, i: (b, 0, i)),  # ragged last tile OK
        ),
        compiler_params=pltpu.CompilerParams(
            dimension_semantics=("parallel", "parallel"),
        ),
    )(w2, taps)


def _reference_forward(x, weight, kernel_size, stride):
    """Independent pure-JAX reference (XLA conv, same semantics as the PyTorch module)."""
    if x.ndim == 2:
        x = x[:, None, :]
    out = jax.lax.conv_general_dilated(
        x, weight,
        window_strides=(stride,),
        padding="VALID",
        dimension_numbers=("NCH", "OIH", "NCH"),
        precision=jax.lax.Precision.HIGHEST,
    )
    return jnp.maximum(out, 0.0)


if __name__ == "__main__":
    # Module hyperparameters (matches the Encoder docstring example).
    kernel_size = 4
    out_channels = 64
    in_channels = 1
    stride = kernel_size // 2

    # Deterministic parameter + input init.
    key = jax.random.PRNGKey(0)
    k_w, k_x = jax.random.split(key)

    # PyTorch Conv1d weight shape: [out_channels, in_channels, kernel_size]
    weight = jax.random.normal(
        k_w, (out_channels, in_channels, kernel_size), dtype=jnp.float32
    ) * (1.0 / jnp.sqrt(in_channels * kernel_size))

    # Input [B, L] as in Encoder.forward (in_channels == 1 path); docstring example size.
    B, L = 2, 1000
    x = jax.random.normal(k_x, (B, L), dtype=jnp.float32)

    fwd = jax.jit(functools.partial(
        encoder_forward, kernel_size=kernel_size, stride=stride))
    out = fwd(x, weight)
    jax.block_until_ready(out)

    T_out = (L - kernel_size) // stride + 1
    ref = _reference_forward(x, weight, kernel_size, stride)
    assert out.shape == (B, out_channels, T_out), out.shape
    assert jnp.allclose(out, ref, atol=1e-5, rtol=1e-5), "mismatch vs reference"

    print("KERNEL_OK")
</pallas_src>

<mosaic_0001>
module attributes {stable_mosaic.version = 11 : i64} {
  func.func @_conv_relu_kernel(%arg0: i32, %arg1: i32, %arg2: memref<64x4xf32, #tpu.memory_space<vmem>>, %arg3: memref<1x4x512xf32, #tpu.memory_space<vmem>>, %arg4: memref<1x64x512xf32, #tpu.memory_space<vmem>>) attributes {dimension_semantics = [#tpu.dimension_semantics<parallel>, #tpu.dimension_semantics<parallel>], iteration_bounds = array<i64: 2, 1>, scalar_prefetch = 0 : i64, scratch_operands = 0 : i64, tpu.core_type = #tpu.core_type<tc>, window_params = [{pipeline_mode = #tpu.pipeline_mode<synchronous>, transform_indices = @transform_0, window_bounds = array<i64: 64, 4>}, {transform_indices = @transform_1, window_bounds = array<i64: 1, 4, 512>}, {transform_indices = @transform_2, window_bounds = array<i64: 1, 64, 512>}]} {
    %c0 = arith.constant 0 : index
    %c0_0 = arith.constant 0 : index
    %0 = vector.load %arg2[%c0, %c0_0] : memref<64x4xf32, #tpu.memory_space<vmem>>, vector<64x4xf32>
    %1 = vector.extract_strided_slice %0 {offsets = [0, 0], sizes = [64, 1], strides = [1, 1]} : vector<64x4xf32> to vector<64x1xf32>
    %c0_1 = arith.constant 0 : index
    %c0_2 = arith.constant 0 : index
    %c0_3 = arith.constant 0 : index
    %2 = vector.load %arg3[%c0_1, %c0_2, %c0_3] : memref<1x4x512xf32, #tpu.memory_space<vmem>>, vector<1x1x512xf32>
    %3 = vector.shape_cast %2 : vector<1x1x512xf32> to vector<1x512xf32>
    %4 = vector.broadcast %1 : vector<64x1xf32> to vector<64x512xf32>
    %5 = vector.broadcast %3 : vector<1x512xf32> to vector<64x512xf32>
    %6 = arith.mulf %4, %5 : vector<64x512xf32>
    %7 = vector.extract_strided_slice %0 {offsets = [0, 1], sizes = [64, 1], strides = [1, 1]} : vector<64x4xf32> to vector<64x1xf32>
    %c0_4 = arith.constant 0 : index
    %c1 = arith.constant 1 : index
    %c0_5 = arith.constant 0 : index
    %8 = vector.load %arg3[%c0_4, %c1, %c0_5] : memref<1x4x512xf32, #tpu.memory_space<vmem>>, vector<1x1x512xf32>
    %9 = vector.shape_cast %8 : vector<1x1x512xf32> to vector<1x512xf32>
    %10 = vector.broadcast %7 : vector<64x1xf32> to vector<64x512xf32>
    %11 = vector.broadcast %9 : vector<1x512xf32> to vector<64x512xf32>
    %12 = arith.mulf %10, %11 : vector<64x512xf32>
    %13 = arith.addf %6, %12 : vector<64x512xf32>
    %14 = vector.extract_strided_slice %0 {offsets = [0, 2], sizes = [64, 1], strides = [1, 1]} : vector<64x4xf32> to vector<64x1xf32>
    %c0_6 = arith.constant 0 : index
    %c2 = arith.constant 2 : index
    %c0_7 = arith.constant 0 : index
    %15 = vector.load %arg3[%c0_6, %c2, %c0_7] : memref<1x4x512xf32, #tpu.memory_space<vmem>>, vector<1x1x512xf32>
    %16 = vector.shape_cast %15 : vector<1x1x512xf32> to vector<1x512xf32>
    %17 = vector.broadcast %14 : vector<64x1xf32> to vector<64x512xf32>
    %18 = vector.broadcast %16 : vector<1x512xf32> to vector<64x512xf32>
    %19 = arith.mulf %17, %18 : vector<64x512xf32>
    %20 = arith.addf %13, %19 : vector<64x512xf32>
    %21 = vector.extract_strided_slice %0 {offsets = [0, 3], sizes = [64, 1], strides = [1, 1]} : vector<64x4xf32> to vector<64x1xf32>
    %c0_8 = arith.constant 0 : index
    %c3 = arith.constant 3 : index
    %c0_9 = arith.constant 0 : index
    %22 = vector.load %arg3[%c0_8, %c3, %c0_9] : memref<1x4x512xf32, #tpu.memory_space<vmem>>, vector<1x1x512xf32>
    %23 = vector.shape_cast %22 : vector<1x1x512xf32> to vector<1x512xf32>
    %24 = vector.broadcast %21 : vector<64x1xf32> to vector<64x512xf32>
    %25 = vector.broadcast %23 : vector<1x512xf32> to vector<64x512xf32>
    %26 = arith.mulf %24, %25 : vector<64x512xf32>
    %27 = arith.addf %20, %26 : vector<64x512xf32>
    %cst = arith.constant 0.000000e+00 : f32
    %28 = vector.broadcast %cst : f32 to vector<64x512xf32>
    %29 = arith.maximumf %27, %28 : vector<64x512xf32>
    %c0_10 = arith.constant 0 : index
    %c0_11 = arith.constant 0 : index
    %c0_12 = arith.constant 0 : index
    %30 = vector.load %arg4[%c0_10, %c0_11, %c0_12] : memref<1x64x512xf32, #tpu.memory_space<vmem>>, vector<1x64x512xf32>
    %31 = vector.shape_cast %30 : vector<1x64x512xf32> to vector<64x512xf32>
    %32 = vector.shape_cast %29 : vector<64x512xf32> to vector<1x64x512xf32>
    tpu.vector_store %arg4[%c0_10, %c0_11, %c0_12], %32 {strides = array<i32>} : memref<1x64x512xf32, #tpu.memory_space<vmem>>, vector<1x64x512xf32>,
    return
  }
  func.func @transform_0(%arg0: i32, %arg1: i32) -> (i32, i32) {
    %c0_i32 = arith.constant 0 : i32
    %c0_i32_0 = arith.constant 0 : i32
    %c0_i32_1 = arith.constant 0 : i32
    return %c0_i32, %c0_i32_0 : i32, i32
  }
  func.func @transform_1(%arg0: i32, %arg1: i32) -> (i32, i32, i32) {
    %c0_i32 = arith.constant 0 : i32
    %c0_i32_0 = arith.constant 0 : i32
    return %arg0, %c0_i32, %arg1 : i32, i32, i32
  }
  func.func @transform_2(%arg0: i32, %arg1: i32) -> (i32, i32, i32) {
    %c0_i32 = arith.constant 0 : i32
    %c0_i32_0 = arith.constant 0 : i32
    return %arg0, %c0_i32, %arg1 : i32, i32, i32
  }
}

</mosaic_0001>

<bundles_post_ra>
// kernel: encoder_forward.1
= control target key start
LH: loop header
LB: loop body
LE: loop exit
PB: predicated region body
PF: predicated region fallthrough
CT: control target
= control target key end

     0   :  { %7 = vsyncpa [#allocation3], 0  ;;  %s1419_s0 = inlined_call_operand.vmem [shape: f32[64,4], index: 0, kind: input, shape index: {}]   ;;  %s1420_s1 = inlined_call_operand.vmem [shape: f32[2,4,512], index: 1, kind: input, shape index: {}]   ;;  %s1421_s2 = inlined_call_operand.hbm [shape: f32[2,64,499], index: 2, kind: output, shape index: {}]  }
   0x1   :  { %9 = vsyncpa [#allocation3 + $0x1], 0  ;;  %s978_s9 = smov 0   ;;  %s980_s10 = smov 0  }
   0x2   :  { %s982_s11 = smov 0   ;;  %s984_s12 = smov 0  }
   0x3   :  { %s986_s13 = smov 0   ;;  %s988_s14 = smov 0  }
   0x4 LB: > { %s791_s15 = sadd.s32 4294967295, %s954_s14   ;;  %s792_s16 = sadd.s32 4294967294, %s954_s14   ;;  %s954_s14 = sphi %s988_s14, %s15_s14   ;;  %s950_s13 = sphi %s986_s13, %s1442_s13   ;;  %s946_s12 = sphi %s984_s12, %s1441_s12   ;;  %s942_s11 = sphi %s982_s11, %s1440_s11   ;;  %s938_s10 = sphi %s980_s10, %s1439_s10   ;;  %s934_s9 = sphi %s978_s9, %s1438_s9  }
   0x5   : > { %s27_s17 = sadd.s32 1, %s950_s13  ;;  %s85_s18 = sadd.s32 1, %s942_s11 }
   0x6   : > { %p29_p0 = scmp.ge.s32.totalorder %s27_s17, 2  ;;  %p95_p1 = scmp.ne.s32.totalorder %s942_s11, %s938_s10 }
   0x7   : > { %p96_p2 = scmp.eq.s32.totalorder %s791_s15, 1  ;;  %p101_p3 = scmp.ne.s32.totalorder %s938_s10, %s934_s9 }
   0x8   : > { %s1444_s17 = smov (%p29_p0, %s27_s17), 0  ;;  %p102_p5 = scmp.eq.s32.totalorder %s792_s16, 1 }
   0x9   : > { %p1018_p4 = por %p96_p2, %p95_p1  ;;  %s80_s20 = ssub.s32 %s950_s13, %s1444_s17 }
   0xa   : > { %p795_p6 = scmp.ge.s32.totalorder %s954_s14, 1  ;;  %p83_p7 = scmp.eq.s32.totalorder %s80_s20, 0 }
   0xb   : > { %p1025_p8 = por %p102_p5, %p101_p3  ;;  %p136_p9 = scmp.lt.s32.totalorder %s954_s14, 3 }
   0xc   : > { %s1031_s22 = scalar_select %p83_p7, %s942_s11, %s85_s18  }
   0xd   : > { %p137_p10 = pnand %p795_p6, %p136_p9 }
   0xf   : > { %140 = sbr.rel (%p137_p10) target bundleno = 238 (0xee), region = 28 }
  0x14   : > { %v175_v0 = vld [vmem:[%s1419_s0 + $0x10] sm:$0xff]  ;;  %v173_v1 = vld [vmem:[%s1419_s0] sm:$0xff]  ;;  %v956_v2 = vmov 0   ;;  %v176_v3 = vld [vmem:[%s1419_s0 + $0x18] sm:$0xff]  ;;  %v957_v9 = vmov 1   ;;  %v958_v10 = vmov 2   ;;  %v223_v12 = vlaneseq }
  0x15   : > { %871 = vset.pattern.permute.xlu1 %v956_v2  ;;  %870 = vset.pattern.permute.xlu0 %v956_v2  ;;  %v174_v4 = vld [vmem:[%s1419_s0 + $0x8] sm:$0xff]  ;;  %v177_v6 = vld [vmem:[%s1419_s0 + $0x20] sm:$0xff]  ;;  %v180_v7 = vld [vmem:[%s1419_s0 + $0x38] sm:$0xff]  ;;  %v959_v11 = vmov 3   ;;  %p163_p11 = scmp.lt.s32.totalorder %s946_s12, 1  ;;  %s159_s26 = sand.u32 1, %s938_s10  }
  0x16   : > { %194 = vperm.xlu1 %871, %v175_v0   ;;  %184 = vperm.xlu0 %870, %v173_v1   ;;  %v178_v5 = vld [vmem:[%s1419_s0 + $0x28] sm:$0xff]  ;;  %v179_v8 = vld [vmem:[%s1419_s0 + $0x30] sm:$0xff]  ;;  %v224_v13 = vshrl.u32 %v223_v12, 7  ;;  %s796_s27 = sshll.u32 %s159_s26, 8  ;;  %s808_s29 = sshll.u32 %s946_s12, 12 }
  0x17   : > { %s164_s18 = scalar_select %p163_p11, %s946_s12, 1 }
  0x18   : > { %v225_v16 = vsub.s32 0, %v224_v13  ;;  %v229_v17 = vsub.s32 1, %v224_v13  ;;  %v233_v18 = vsub.s32 2, %v224_v13  ;;  %v237_v19 = vsub.s32 3, %v224_v13  ;;  %s1273_s28 = scalar_lea.vmem [#allocation2], %s796_s27  ;;  %s1364_s4 = scalar_lea.hbm %s1421_s2, %s808_s29 }
  0x19   : > { %s807_s20 = sshll.u32 %s164_s18, 4  ;;  %s712_s30 = sshll.u32 %s1273_s28, 4  ;;  %s1366_s30 = int_to_ptr.vmem [resolvable:$true] %s712_s30 }
  0x1a   : > { %199 = vperm.xlu1 %871, %v176_v3   ;;  %189 = vperm.xlu0 %870, %v174_v4   ;;  %s170_s25 = scalar_lea.vmem %s1420_s1, %s807_s20  ;;  %s1374_s5 = scalar_lea.sflag [#allocation3], %s159_s26 }
  0x1b   : > { %v181_v20 = vld [vmem:[%s170_s25] ss:$4 sm:$0xf]  ;;  %v799_v23 = vld [vmem:[%s170_s25 + $0x1] ss:$4 sm:$0xf] }
  0x1c   : > { %v800_v24 = vld [vmem:[%s170_s25 + $0x2] ss:$4 sm:$0xf]  ;;  %v226_v25 = vrot.slane %v181_v20, %v225_v16  ;;  %v230_v26 = vrot.slane %v181_v20, %v229_v17  ;;  %v234_v27 = vrot.slane %v181_v20, %v233_v18  ;;  %v238_v28 = vrot.slane %v181_v20, %v237_v19  ;;  %v801_v29 = vld [vmem:[%s170_s25 + $0x3] ss:$4 sm:$0xf] }
  0x1d   : > { %v1062_v32 = vrot.slane %v799_v23, %v225_v16  ;;  %v1064_v33 = vrot.slane %v799_v23, %v229_v17  ;;  %v1066_v34 = vrot.slane %v799_v23, %v233_v18  ;;  %v1068_v35 = vrot.slane %v799_v23, %v237_v19  ;;  %s878_s6 = scalar_lea.vmem %s1366_s30, 4096  ;;  %s960_s7 = smov [#allocation2]  }
  0x1e   : > { %209 = vperm.xlu1 %871, %v178_v5   ;;  %204 = vperm.xlu0 %870, %v177_v6   ;;  %v1070_v36 = vrot.slane %v800_v24, %v225_v16  ;;  %v1072_v37 = vrot.slane %v800_v24, %v229_v17  ;;  %v1074_v38 = vrot.slane %v800_v24, %v233_v18  ;;  %p879_p12 = scmp.ne.s32.totalorder %s1366_s30, %s878_s6  ;;  %s882_s8 = sshll.u32 %s960_s7, 4  ;;  %s883_s8 = int_to_ptr.vmem [resolvable:$false] %s882_s8 }
  0x1f   : > { %v1076_v39 = vrot.slane %v800_v24, %v237_v19  ;;  %v1078_v40 = vrot.slane %v801_v29, %v225_v16  ;;  %v1080_v41 = vrot.slane %v801_v29, %v229_v17  ;;  %v1082_v42 = vrot.slane %v801_v29, %v233_v18  ;;  %s884_s15 = scalar_lea.vmem %s883_s8, 8192  ;;  %p885_p1 = scmp.lt.s32.totalorder %s1366_s30, %s883_s8 }
  0x20   : > { %v1084_v43 = vrot.slane %v801_v29, %v237_v19  ;;  %p880_p13 = pnand %p879_p12, %p1018_p4  ;;  %p886_p2 = scmp.lt.s32.totalorder %s884_s15, %s878_s6 }
  0x21   : > { %1428 = vst [vmem:[#allocation5_spill] sm:$0xff] %v1078_v40  ;;  %1429 = vst [vmem:[#allocation6_spill] sm:$0xff] %v1080_v41 }
  0x22   : > { %219 = vperm.xlu1 %871, %v180_v7   ;;  %214 = vperm.xlu0 %870, %v179_v8   ;;  %1430 = vst [vmem:[#allocation7_spill] sm:$0xff] %v1082_v42  ;;  %1431 = vst [vmem:[#allocation8_spill] sm:$0xff] %v1084_v43  ;;  %p881_p0 = pneg %p880_p13  ;;  %p887_p3 = por %p886_p2, %p885_p1 }
  0x24   : > { %p888_p5 = pnand %p887_p3, %p881_p0 }
  0x26   : > { %873 = vset.pattern.permute.xlu1 %v957_v9  ;;  %872 = vset.pattern.permute.xlu0 %v957_v9 }
  0x27   : > { %282 = vperm.xlu1 %873, %v174_v4   ;;  %278 = vperm.xlu0 %872, %v173_v1  }
  0x2b   : > { %286 = vperm.xlu1 %873, %v175_v0   ;;  %290 = vperm.xlu0 %872, %v176_v3  }
  0x2f   : > { %294 = vperm.xlu1 %873, %v177_v6   ;;  %298 = vperm.xlu0 %872, %v178_v5  }
  0x33   : > { %302 = vperm.xlu1 %873, %v179_v8   ;;  %306 = vperm.xlu0 %872, %v180_v7  }
  0x37   : > { %874 = vset.pattern.permute.xlu1 %v958_v10  ;;  %875 = vset.pattern.permute.xlu0 %v958_v10 }
  0x38   : > { %397 = vperm.xlu1 %874, %v173_v1   ;;  %401 = vperm.xlu0 %875, %v174_v4  }
  0x3c   : > { %405 = vperm.xlu1 %874, %v175_v0   ;;  %413 = vperm.xlu0 %875, %v177_v6  }
  0x40   : > { %409 = vperm.xlu1 %874, %v176_v3   ;;  %421 = vperm.xlu0 %875, %v179_v8  }
  0x44   : > { %417 = vperm.xlu1 %874, %v178_v5   ;;  %876 = vset.pattern.permute.xlu0 %v959_v11 }
  0x45   : > { %516 = vperm.xlu0 %876, %v173_v1  }
  0x48   : > { %425 = vperm.xlu1 %874, %v180_v7  }
  0x49   : > { %528 = vperm.xlu0 %876, %v176_v3  }
  0x4c   : > { %877 = vset.pattern.permute.xlu1 %v959_v11 }
  0x4d   : > { %520 = vperm.xlu1 %877, %v174_v4   ;;  %536 = vperm.xlu0 %876, %v178_v5  }
  0x51   : > { %524 = vperm.xlu1 %877, %v175_v0   ;;  %544 = vperm.xlu0 %876, %v180_v7  }
  0x55   : > { %532 = vperm.xlu1 %877, %v177_v6  }
  0x59   : > { %540 = vperm.xlu1 %877, %v179_v8  }
  0x91   : > { %v195_v14 = vpop.permute.xlu1 %194  ;;  %v185_v15 = vpop.permute.xlu0 %184 }
  0x92   : > { %v251_v44 = vmul.f32 %v226_v25, %v195_v14  ;;  %v252_v45 = vmul.f32 %v230_v26, %v195_v14  ;;  %v253_v46 = vmul.f32 %v234_v27, %v195_v14  ;;  %v254_v47 = vmul.f32 %v238_v28, %v195_v14 }
  0x93   : > { %v243_v48 = vmul.f32 %v226_v25, %v185_v15  ;;  %v244_v49 = vmul.f32 %v230_v26, %v185_v15  ;;  %v245_v50 = vmul.f32 %v234_v27, %v185_v15  ;;  %v246_v51 = vmul.f32 %v238_v28, %v185_v15 }
  0x95   : > { %v200_v21 = vpop.permute.xlu1 %199  ;;  %v190_v22 = vpop.permute.xlu0 %189 }
  0x96   : > { %v255_v54 = vmul.f32 %v226_v25, %v200_v21  ;;  %v256_v55 = vmul.f32 %v230_v26, %v200_v21  ;;  %v257_v56 = vmul.f32 %v234_v27, %v200_v21  ;;  %v258_v57 = vmul.f32 %v238_v28, %v200_v21 }
  0x97   : > { %v247_v58 = vmul.f32 %v226_v25, %v190_v22  ;;  %v248_v59 = vmul.f32 %v230_v26, %v190_v22  ;;  %v249_v60 = vmul.f32 %v234_v27, %v190_v22  ;;  %v250_v61 = vmul.f32 %v238_v28, %v190_v22 }
  0x99   : > { %v210_v30 = vpop.permute.xlu1 %209  ;;  %v205_v31 = vpop.permute.xlu0 %204 }
  0x9a   : > { %v1086_v62 = vmul.f32 %v226_v25, %v210_v30  ;;  %v1088_v63 = vmul.f32 %v230_v26, %v210_v30  ;;  %v1090_v0 = vmul.f32 %v234_v27, %v210_v30  ;;  %v1092_v1 = vmul.f32 %v238_v28, %v210_v30 }
  0x9b   : > { %v259_v2 = vmul.f32 %v226_v25, %v205_v31  ;;  %v260_v3 = vmul.f32 %v230_v26, %v205_v31  ;;  %v261_v4 = vmul.f32 %v234_v27, %v205_v31  ;;  %v262_v5 = vmul.f32 %v238_v28, %v205_v31 }
  0x9d   : > { %v220_v52 = vpop.permute.xlu1 %219  ;;  %v215_v53 = vpop.permute.xlu0 %214 }
  0x9e   : > { %v1094_v6 = vmul.f32 %v226_v25, %v220_v52  ;;  %v1096_v7 = vmul.f32 %v230_v26, %v220_v52  ;;  %v1098_v8 = vmul.f32 %v234_v27, %v220_v52  ;;  %v1100_v9 = vmul.f32 %v238_v28, %v220_v52 }
  0x9f   : > { %v267_v16 = vmul.f32 %v226_v25, %v215_v53  ;;  %v268_v17 = vmul.f32 %v230_v26, %v215_v53  ;;  %v269_v18 = vmul.f32 %v234_v27, %v215_v53  ;;  %v270_v19 = vmul.f32 %v238_v28, %v215_v53 }
  0xa2   : > { %v283_v10 = vpop.permute.xlu1 %282  ;;  %v279_v11 = vpop.permute.xlu0 %278 }
  0xa3   : > { %v334_v12 = vmul.f32 %v1062_v32, %v283_v10  ;;  %v335_v13 = vmul.f32 %v1064_v33, %v283_v10  ;;  %v336_v14 = vmul.f32 %v1066_v34, %v283_v10  ;;  %v337_v15 = vmul.f32 %v1068_v35, %v283_v10 }
  0xa4   : > { %v330_v20 = vmul.f32 %v1062_v32, %v279_v11  ;;  %v331_v21 = vmul.f32 %v1064_v33, %v279_v11  ;;  %v332_v22 = vmul.f32 %v1066_v34, %v279_v11  ;;  %v333_v23 = vmul.f32 %v1068_v35, %v279_v11 }
  0xa5   : > { %v1110_v24 = vadd.f32 %v334_v12, %v247_v58  ;;  %v1112_v29 = vadd.f32 %v335_v13, %v248_v59  ;;  %v1114_v30 = vadd.f32 %v336_v14, %v249_v60  ;;  %v1116_v31 = vadd.f32 %v337_v15, %v250_v61 }
  0xa6   : > { %v287_v25 = vpop.permute.xlu1 %286  ;;  %v291_v26 = vpop.permute.xlu0 %290  ;;  %v362_v61 = vadd.f32 %v330_v20, %v243_v48  ;;  %v363_v11 = vadd.f32 %v331_v21, %v244_v49  ;;  %v364_v12 = vadd.f32 %v332_v22, %v245_v50  ;;  %v365_v13 = vadd.f32 %v333_v23, %v246_v51 }
  0xa7   : > { %1432 = vst [vmem:[#allocation9_spill] sm:$0xff] %v1116_v31  ;;  %v338_v27 = vmul.f32 %v1062_v32, %v287_v25  ;;  %v339_v28 = vmul.f32 %v1064_v33, %v287_v25  ;;  %v340_v52 = vmul.f32 %v1066_v34, %v287_v25  ;;  %v341_v53 = vmul.f32 %v1068_v35, %v287_v25 }
  0xa8   : > { %v342_v10 = vmul.f32 %v1062_v32, %v291_v26  ;;  %v343_v58 = vmul.f32 %v1064_v33, %v291_v26  ;;  %v344_v59 = vmul.f32 %v1066_v34, %v291_v26  ;;  %v345_v60 = vmul.f32 %v1068_v35, %v291_v26 }
  0xa9   : > { %v1126_v14 = vadd.f32 %v338_v27, %v251_v44  ;;  %v1128_v15 = vadd.f32 %v339_v28, %v252_v45  ;;  %v1130_v43 = vadd.f32 %v340_v52, %v253_v46  ;;  %v1132_v42 = vadd.f32 %v341_v53, %v254_v47 }
  0xaa   : > { %v295_v25 = vpop.permute.xlu1 %294  ;;  %v299_v41 = vpop.permute.xlu0 %298  ;;  %v1138_v49 = vadd.f32 %v342_v10, %v255_v54  ;;  %v1140_v44 = vadd.f32 %v343_v58, %v256_v55  ;;  %v1142_v45 = vadd.f32 %v344_v59, %v257_v56  ;;  %v1144_v46 = vadd.f32 %v345_v60, %v258_v57 }
  0xab   : > { %v346_v40 = vmul.f32 %v1062_v32, %v295_v25  ;;  %v347_v31 = vmul.f32 %v1064_v33, %v295_v25  ;;  %v348_v26 = vmul.f32 %v1066_v34, %v295_v25  ;;  %v349_v48 = vmul.f32 %v1068_v35, %v295_v25 }
  0xac   : > { %v350_v47 = vmul.f32 %v1062_v32, %v299_v41  ;;  %v351_v50 = vmul.f32 %v1064_v33, %v299_v41  ;;  %v352_v51 = vmul.f32 %v1066_v34, %v299_v41  ;;  %v353_v20 = vmul.f32 %v1068_v35, %v299_v41 }
  0xad   : > { %v378_v21 = vadd.f32 %v346_v40, %v259_v2  ;;  %v379_v22 = vadd.f32 %v347_v31, %v260_v3  ;;  %v380_v23 = vadd.f32 %v348_v26, %v261_v4  ;;  %v381_v27 = vadd.f32 %v349_v48, %v262_v5 }
  0xae   : > { %v303_v54 = vpop.permute.xlu1 %302  ;;  %v307_v28 = vpop.permute.xlu0 %306  ;;  %v1159_v2 = vadd.f32 %v350_v47, %v1086_v62  ;;  %v1162_v3 = vadd.f32 %v351_v50, %v1088_v63  ;;  %v1165_v4 = vadd.f32 %v352_v51, %v1090_v0  ;;  %v1168_v5 = vadd.f32 %v353_v20, %v1092_v1  ;;  %v1433_v51 = vld [vmem:[#allocation9_spill] sm:$0xff] }
  0xaf   : > { %v354_v55 = vmul.f32 %v1062_v32, %v303_v54  ;;  %v355_v56 = vmul.f32 %v1064_v33, %v303_v54  ;;  %v356_v57 = vmul.f32 %v1066_v34, %v303_v54  ;;  %v357_v52 = vmul.f32 %v1068_v35, %v303_v54 }
  0xb0   : > { %v358_v53 = vmul.f32 %v1062_v32, %v307_v28  ;;  %v359_v10 = vmul.f32 %v1064_v33, %v307_v28  ;;  %v360_v41 = vmul.f32 %v1066_v34, %v307_v28  ;;  %v361_v40 = vmul.f32 %v1068_v35, %v307_v28 }
  0xb1   : > { %v386_v31 = vadd.f32 %v354_v55, %v267_v16  ;;  %v387_v32 = vadd.f32 %v355_v56, %v268_v17  ;;  %v388_v58 = vadd.f32 %v356_v57, %v269_v18  ;;  %v389_v33 = vadd.f32 %v357_v52, %v270_v19 }
  0xb2   : > { %v1171_v34 = vadd.f32 %v358_v53, %v1094_v6  ;;  %v1174_v35 = vadd.f32 %v359_v10, %v1096_v7  ;;  %v1177_v62 = vadd.f32 %v360_v41, %v1098_v8  ;;  %v1180_v63 = vadd.f32 %v361_v40, %v1100_v9 }
  0xb3   : > { %v398_v0 = vpop.permute.xlu1 %397  ;;  %v402_v59 = vpop.permute.xlu0 %401 }
  0xb4   : > { %v449_v1 = vmul.f32 %v1070_v36, %v398_v0  ;;  %v450_v16 = vmul.f32 %v1072_v37, %v398_v0  ;;  %v451_v17 = vmul.f32 %v1074_v38, %v398_v0  ;;  %v452_v6 = vmul.f32 %v1076_v39, %v398_v0 }
  0xb5   : > { %v453_v18 = vmul.f32 %v1070_v36, %v402_v59  ;;  %v454_v7 = vmul.f32 %v1072_v37, %v402_v59  ;;  %v455_v8 = vmul.f32 %v1074_v38, %v402_v59  ;;  %v456_v19 = vmul.f32 %v1076_v39, %v402_v59 }
  0xb6   : > { %v481_v9 = vadd.f32 %v449_v1, %v362_v61  ;;  %v482_v60 = vadd.f32 %v450_v16, %v363_v11  ;;  %v483_v25 = vadd.f32 %v451_v17, %v364_v12  ;;  %v484_v26 = vadd.f32 %v452_v6, %v365_v13 }
  0xb7   : > { %v1191_v48 = vadd.f32 %v453_v18, %v1110_v24  ;;  %v1194_v47 = vadd.f32 %v454_v7, %v1112_v29  ;;  %v1197_v50 = vadd.f32 %v455_v8, %v1114_v30  ;;  %v1200_v20 = vadd.f32 %v456_v19, %v1433_v51  ;;  %v406_v54 = vpop.permute.xlu1 %405  ;;  %v414_v28 = vpop.permute.xlu0 %413 }
  0xb8   : > { %v457_v55 = vmul.f32 %v1070_v36, %v406_v54  ;;  %v458_v61 = vmul.f32 %v1072_v37, %v406_v54  ;;  %v459_v11 = vmul.f32 %v1074_v38, %v406_v54  ;;  %v460_v24 = vmul.f32 %v1076_v39, %v406_v54 }
  0xb9   : > { %v465_v12 = vmul.f32 %v1070_v36, %v414_v28  ;;  %v466_v29 = vmul.f32 %v1072_v37, %v414_v28  ;;  %v467_v30 = vmul.f32 %v1074_v38, %v414_v28  ;;  %v468_v13 = vmul.f32 %v1076_v39, %v414_v28 }
  0xba   : > { %v1211_v56 = vadd.f32 %v457_v55, %v1126_v14  ;;  %v1214_v57 = vadd.f32 %v458_v61, %v1128_v15  ;;  %v1217_v52 = vadd.f32 %v459_v11, %v1130_v43  ;;  %v1220_v53 = vadd.f32 %v460_v24, %v1132_v42  ;;  %v1435_v61 = vld [vmem:[#allocation6_spill] sm:$0xff]  ;;  %v1436_v11 = vld [vmem:[#allocation7_spill] sm:$0xff]  ;;  %v1437_v24 = vld [vmem:[#allocation8_spill] sm:$0xff] }
  0xbb   : > { %v1222_v10 = vadd.f32 %v465_v12, %v378_v21  ;;  %v1224_v41 = vadd.f32 %v466_v29, %v379_v22  ;;  %v1226_v40 = vadd.f32 %v467_v30, %v380_v23  ;;  %v1228_v0 = vadd.f32 %v468_v13, %v381_v27  ;;  %v410_v14 = vpop.permute.xlu1 %409  ;;  %v422_v59 = vpop.permute.xlu0 %421 }
  0xbc   : > { %v461_v15 = vmul.f32 %v1070_v36, %v410_v14  ;;  %v462_v1 = vmul.f32 %v1072_v37, %v410_v14  ;;  %v463_v43 = vmul.f32 %v1074_v38, %v410_v14  ;;  %v464_v42 = vmul.f32 %v1076_v39, %v410_v14 }
  0xbd   : > { %v473_v21 = vmul.f32 %v1070_v36, %v422_v59  ;;  %v474_v22 = vmul.f32 %v1072_v37, %v422_v59  ;;  %v475_v23 = vmul.f32 %v1074_v38, %v422_v59  ;;  %v476_v16 = vmul.f32 %v1076_v39, %v422_v59 }
  0xbe   : > { %v493_v27 = vadd.f32 %v461_v15, %v1138_v49  ;;  %v494_v17 = vadd.f32 %v462_v1, %v1140_v44  ;;  %v495_v6 = vadd.f32 %v463_v43, %v1142_v45  ;;  %v496_v18 = vadd.f32 %v464_v42, %v1144_v46  ;;  %v1434_v46 = vld [vmem:[#allocation5_spill] sm:$0xff] }
  0xbf   : > { %v418_v7 = vpop.permute.xlu1 %417  ;;  %v1243_v8 = vadd.f32 %v473_v21, %v386_v31  ;;  %v1245_v19 = vadd.f32 %v474_v22, %v387_v32  ;;  %v1247_v51 = vadd.f32 %v475_v23, %v388_v58  ;;  %v1249_v54 = vadd.f32 %v476_v16, %v389_v33 }
  0xc0   : > { %v469_v28 = vmul.f32 %v1070_v36, %v418_v7  ;;  %v470_v49 = vmul.f32 %v1072_v37, %v418_v7  ;;  %v471_v44 = vmul.f32 %v1074_v38, %v418_v7  ;;  %v472_v45 = vmul.f32 %v1076_v39, %v418_v7  ;;  %v517_v55 = vpop.permute.xlu0 %516 }
  0xc1   : > { %v568_v31 = vmul.f32 %v1434_v46, %v517_v55  ;;  %v569_v32 = vmul.f32 %v1435_v61, %v517_v55  ;;  %v570_v58 = vmul.f32 %v1436_v11, %v517_v55  ;;  %v571_v33 = vmul.f32 %v1437_v24, %v517_v55 }
  0xc2   : > { %v501_v12 = vadd.f32 %v469_v28, %v1159_v2  ;;  %v502_v29 = vadd.f32 %v470_v49, %v1162_v3  ;;  %v503_v30 = vadd.f32 %v471_v44, %v1165_v4  ;;  %v504_v13 = vadd.f32 %v472_v45, %v1168_v5 }
  0xc3   : > { %v600_v14 = vadd.f32 %v568_v31, %v481_v9  ;;  %v601_v59 = vadd.f32 %v569_v32, %v482_v60  ;;  %v602_v15 = vadd.f32 %v570_v58, %v483_v25  ;;  %v603_v1 = vadd.f32 %v571_v33, %v484_v26  ;;  %v426_v43 = vpop.permute.xlu1 %425 }
  0xc4   : > { %v477_v42 = vmul.f32 %v1070_v36, %v426_v43  ;;  %v478_v21 = vmul.f32 %v1072_v37, %v426_v43  ;;  %v479_v22 = vmul.f32 %v1074_v38, %v426_v43  ;;  %v480_v23 = vmul.f32 %v1076_v39, %v426_v43  ;;  %v529_v2 = vpop.permute.xlu0 %528 }
  0xc5   : > { %v632_v16 = vmax.f32 %v600_v14, 0.0  ;;  %v633_v3 = vmax.f32 %v601_v59, 0.0  ;;  %v634_v7 = vmax.f32 %v602_v15, 0.0  ;;  %v635_v4 = vmax.f32 %v603_v1, 0.0 }
  0xc6   : > { %v580_v5 = vmul.f32 %v1434_v46, %v529_v2  ;;  %v581_v9 = vmul.f32 %v1435_v61, %v529_v2  ;;  %v582_v60 = vmul.f32 %v1436_v11, %v529_v2  ;;  %v583_v25 = vmul.f32 %v1437_v24, %v529_v2 }
  0xc7   : > { %664 = vst [vmem:[%s1273_s28] sm:$0xff] %v632_v16  ;;  %665 = vst [vmem:[%s1273_s28 + $0x8] sm:$0xff] %v633_v3  ;;  %v1280_v36 = vadd.f32 %v477_v42, %v1171_v34  ;;  %v1283_v37 = vadd.f32 %v478_v21, %v1174_v35  ;;  %v1286_v38 = vadd.f32 %v479_v22, %v1177_v62 }
  0xc8   : > { %666 = vst [vmem:[%s1273_s28 + $0x10] sm:$0xff] %v634_v7  ;;  %667 = vst [vmem:[%s1273_s28 + $0x18] sm:$0xff] %v635_v4  ;;  %v1289_v39 = vadd.f32 %v480_v23, %v1180_v63  ;;  %v612_v26 = vadd.f32 %v580_v5, %v493_v27  ;;  %v613_v28 = vadd.f32 %v581_v9, %v494_v17  ;;  %v521_v45 = vpop.permute.xlu1 %520  ;;  %v537_v31 = vpop.permute.xlu0 %536 }
  0xc9   : > { %v614_v49 = vadd.f32 %v582_v60, %v495_v6  ;;  %v615_v44 = vadd.f32 %v583_v25, %v496_v18  ;;  %v572_v34 = vmul.f32 %v1434_v46, %v521_v45  ;;  %v573_v35 = vmul.f32 %v1435_v61, %v521_v45 }
  0xca   : > { %v574_v55 = vmul.f32 %v1436_v11, %v521_v45  ;;  %v575_v62 = vmul.f32 %v1437_v24, %v521_v45  ;;  %v644_v63 = vmax.f32 %v612_v26, 0.0  ;;  %v645_v32 = vmax.f32 %v613_v28, 0.0 }
  0xcb   : > { %v646_v27 = vmax.f32 %v614_v49, 0.0  ;;  %v647_v17 = vmax.f32 %v615_v44, 0.0  ;;  %v604_v6 = vadd.f32 %v572_v34, %v1191_v48  ;;  %v605_v18 = vadd.f32 %v573_v35, %v1194_v47 }
  0xcc   : > { %v606_v58 = vadd.f32 %v574_v55, %v1197_v50  ;;  %v607_v33 = vadd.f32 %v575_v62, %v1200_v20  ;;  %676 = vst [vmem:[%s1273_s28 + $0x60] sm:$0xff] %v644_v63  ;;  %677 = vst [vmem:[%s1273_s28 + $0x68] sm:$0xff] %v645_v32  ;;  %v588_v14 = vmul.f32 %v1434_v46, %v537_v31  ;;  %v525_v15 = vpop.permute.xlu1 %524 }
  0xcd   : > { %678 = vst [vmem:[%s1273_s28 + $0x70] sm:$0xff] %v646_v27  ;;  %679 = vst [vmem:[%s1273_s28 + $0x78] sm:$0xff] %v647_v17  ;;  %v589_v59 = vmul.f32 %v1435_v61, %v537_v31  ;;  %v590_v48 = vmul.f32 %v1436_v11, %v537_v31  ;;  %v591_v47 = vmul.f32 %v1437_v24, %v537_v31  ;;  %v636_v50 = vmax.f32 %v604_v6, 0.0 }
  0xce   : > { %v637_v1 = vmax.f32 %v605_v18, 0.0  ;;  %v638_v20 = vmax.f32 %v606_v58, 0.0  ;;  %v639_v43 = vmax.f32 %v607_v33, 0.0  ;;  %v620_v42 = vadd.f32 %v588_v14, %v501_v12  ;;  %v545_v12 = vpop.permute.xlu0 %544 }
  0xcf   : > { %v621_v21 = vadd.f32 %v589_v59, %v502_v29  ;;  %v622_v22 = vadd.f32 %v590_v48, %v503_v30  ;;  %v623_v23 = vadd.f32 %v591_v47, %v504_v13  ;;  %668 = vst [vmem:[%s1273_s28 + $0x20] sm:$0xff] %v636_v50  ;;  %v576_v2 = vmul.f32 %v1434_v46, %v525_v15 }
  0xd0   : > { %669 = vst [vmem:[%s1273_s28 + $0x28] sm:$0xff] %v637_v1  ;;  %670 = vst [vmem:[%s1273_s28 + $0x30] sm:$0xff] %v638_v20  ;;  %v577_v16 = vmul.f32 %v1435_v61, %v525_v15  ;;  %v578_v3 = vmul.f32 %v1436_v11, %v525_v15  ;;  %v579_v7 = vmul.f32 %v1437_v24, %v525_v15  ;;  %v652_v29 = vmax.f32 %v620_v42, 0.0  ;;  %v533_v5 = vpop.permute.xlu1 %532 }
  0xd1   : > { %671 = vst [vmem:[%s1273_s28 + $0x38] sm:$0xff] %v639_v43  ;;  %v653_v30 = vmax.f32 %v621_v21, 0.0  ;;  %v654_v13 = vmax.f32 %v622_v22, 0.0  ;;  %v655_v4 = vmax.f32 %v623_v23, 0.0  ;;  %v608_v9 = vadd.f32 %v576_v2, %v1211_v56 }
  0xd2   : > { %v609_v60 = vadd.f32 %v577_v16, %v1214_v57  ;;  %v610_v25 = vadd.f32 %v578_v3, %v1217_v52  ;;  %v611_v26 = vadd.f32 %v579_v7, %v1220_v53  ;;  %684 = vst [vmem:[%s1273_s28 + $0xa0] sm:$0xff] %v652_v29  ;;  %v596_v28 = vmul.f32 %v1434_v46, %v545_v12 }
  0xd3   : > { %685 = vst [vmem:[%s1273_s28 + $0xa8] sm:$0xff] %v653_v30  ;;  %686 = vst [vmem:[%s1273_s28 + $0xb0] sm:$0xff] %v654_v13  ;;  %v597_v49 = vmul.f32 %v1435_v61, %v545_v12  ;;  %v598_v56 = vmul.f32 %v1436_v11, %v545_v12  ;;  %v599_v57 = vmul.f32 %v1437_v24, %v545_v12  ;;  %v640_v44 = vmax.f32 %v608_v9, 0.0 }
  0xd4   : > { %687 = vst [vmem:[%s1273_s28 + $0xb8] sm:$0xff] %v655_v4  ;;  %v641_v52 = vmax.f32 %v609_v60, 0.0  ;;  %v642_v45 = vmax.f32 %v610_v25, 0.0  ;;  %v643_v53 = vmax.f32 %v611_v26, 0.0  ;;  %v628_v34 = vadd.f32 %v596_v28, %v1280_v36  ;;  %v541_v32 = vpop.permute.xlu1 %540 }
  0xd5   : > { %v629_v35 = vadd.f32 %v597_v49, %v1283_v37  ;;  %v630_v55 = vadd.f32 %v598_v56, %v1286_v38  ;;  %v631_v62 = vadd.f32 %v599_v57, %v1289_v39  ;;  %672 = vst [vmem:[%s1273_s28 + $0x40] sm:$0xff] %v640_v44  ;;  %v584_v31 = vmul.f32 %v1434_v46, %v533_v5 }
  0xd6   : > { %673 = vst [vmem:[%s1273_s28 + $0x48] sm:$0xff] %v641_v52  ;;  %674 = vst [vmem:[%s1273_s28 + $0x50] sm:$0xff] %v642_v45  ;;  %v585_v63 = vmul.f32 %v1435_v61, %v533_v5  ;;  %v586_v36 = vmul.f32 %v1436_v11, %v533_v5  ;;  %v587_v37 = vmul.f32 %v1437_v24, %v533_v5  ;;  %v660_v38 = vmax.f32 %v628_v34, 0.0 }
  0xd7   : > { %675 = vst [vmem:[%s1273_s28 + $0x58] sm:$0xff] %v643_v53  ;;  %v661_v39 = vmax.f32 %v629_v35, 0.0  ;;  %v662_v27 = vmax.f32 %v630_v55, 0.0  ;;  %v663_v17 = vmax.f32 %v631_v62, 0.0  ;;  %v616_v6 = vadd.f32 %v584_v31, %v1222_v10 }
  0xd8   : > { %v617_v18 = vadd.f32 %v585_v63, %v1224_v41  ;;  %v618_v58 = vadd.f32 %v586_v36, %v1226_v40  ;;  %v619_v33 = vadd.f32 %v587_v37, %v1228_v0  ;;  %692 = vst [vmem:[%s1273_s28 + $0xe0] sm:$0xff] %v660_v38  ;;  %v592_v14 = vmul.f32 %v1434_v46, %v541_v32 }
  0xd9   : > { %693 = vst [vmem:[%s1273_s28 + $0xe8] sm:$0xff] %v661_v39  ;;  %694 = vst [vmem:[%s1273_s28 + $0xf0] sm:$0xff] %v662_v27  ;;  %v593_v59 = vmul.f32 %v1435_v61, %v541_v32  ;;  %v594_v10 = vmul.f32 %v1436_v11, %v541_v32  ;;  %v595_v41 = vmul.f32 %v1437_v24, %v541_v32  ;;  %v648_v40 = vmax.f32 %v616_v6, 0.0 }
  0xda   : > { %695 = vst [vmem:[%s1273_s28 + $0xf8] sm:$0xff] %v663_v17  ;;  %v649_v0 = vmax.f32 %v617_v18, 0.0  ;;  %v650_v48 = vmax.f32 %v618_v58, 0.0  ;;  %v651_v47 = vmax.f32 %v619_v33, 0.0  ;;  %v624_v15 = vadd.f32 %v592_v14, %v1243_v8 }
  0xdb   : > { %v625_v46 = vadd.f32 %v593_v59, %v1245_v19  ;;  %v626_v61 = vadd.f32 %v594_v10, %v1247_v51  ;;  %v627_v11 = vadd.f32 %v595_v41, %v1249_v54  ;;  %680 = vst [vmem:[%s1273_s28 + $0x80] sm:$0xff] %v648_v40 }
  0xdc   : > { %681 = vst [vmem:[%s1273_s28 + $0x88] sm:$0xff] %v649_v0  ;;  %682 = vst [vmem:[%s1273_s28 + $0x90] sm:$0xff] %v650_v48  ;;  %v656_v8 = vmax.f32 %v624_v15, 0.0 }
  0xdd   : > { %683 = vst [vmem:[%s1273_s28 + $0x98] sm:$0xff] %v651_v47  ;;  %v657_v19 = vmax.f32 %v625_v46, 0.0  ;;  %v658_v51 = vmax.f32 %v626_v61, 0.0  ;;  %v659_v24 = vmax.f32 %v627_v11, 0.0 }
  0xde   : > { %688 = vst [vmem:[%s1273_s28 + $0xc0] sm:$0xff] %v656_v8 }
  0xdf   : > { %689 = vst [vmem:[%s1273_s28 + $0xc8] sm:$0xff] %v657_v19  ;;  %690 = vst [vmem:[%s1273_s28 + $0xd0] sm:$0xff] %v658_v51 }
  0xe0   : > { %691 = vst [vmem:[%s1273_s28 + $0xd8] sm:$0xff] %v659_v24 }
  0xe1   : > { %891 = shalt.err (!%p888_p5)
}
  0xe2   : > { %s892_s16 = scalar_lea.hbm %s1364_s4, 4096  ;;  %s896_s23 = scalar_lea.hbm %s1421_s2, 8192 }
  0xe3   : > { %p893_p6 = scmp.ne.s32.totalorder %s1364_s4, %s892_s16  ;;  %p897_p10 = scmp.lt.s32.totalorder %s1364_s4, %s1421_s2 }
  0xe4   : > { %p898_p11 = scmp.lt.s32.totalorder %s896_s23, %s892_s16 }
  0xe5   : > { %p894_p7 = pnand %p893_p6, %p1018_p4 }
  0xe6   : > { %p899_p12 = por %p898_p11, %p897_p10 }
  0xe7   : > { %p895_p9 = pneg %p894_p7 }
  0xe9   : > { %p900_p13 = pnand %p899_p12, %p895_p9 }
  0xeb   : > { %903 = shalt.err (!%p900_p13)
}
  0xec   : > { %s961_s26 = smov 512   ;;  %s962_s27 = smov 32  }
  0xed   : > { %809 = dma.vmem_to_hbm [thread:$0]  (%p1018_p4), %s1366_s30, 4096, %s1364_s4, %s1374_s5, %s961_s26, %s961_s26, %s962_s27  }
  0xee PF: > { %p815_p0 = scmp.ge.s32.totalorder %s954_s14, 2  ;;  %s727_s28 = sand.u32 1, %s934_s9  }
  0xef   : > { %s728_s29 = scalar_lea.sflag [#allocation3], %s727_s28 }
  0xf0   : > { %p812_p1 = pnand %p815_p0, %p1025_p8 }
  0xf2   : > { %p813_p2 = pneg %p812_p1 }
  0xf4   : > { %929 = dma.done.wait (%p813_p2), %s728_s29, 4096  }
  0xf5   : > { %931 = vsyncadd (%p813_p2), %s728_s29, 4294963200  ;;  %s15_s14 = sadd.s32 1, %s954_s14   ;;  %s1438_s9 = smov %s938_s10 }
  0xf6   : > { %p12_p3 = scmp.ge.s32.totalorder %s15_s14, 4   ;;  %s1439_s10 = smov %s942_s11 }
  0xf7   : > { %s1440_s11 = smov %s1031_s22  ;;  %s1441_s12 = smov %s950_s13 }
  0xf8   : > { %s1442_s13 = smov %s1444_s17  ;;  %14 = sbr.rel (!%p12_p3) target bundleno = 4 (0x4), region = 66 }
  0xfd   :  { %733 = vsyncpa [#allocation3], 1 }
  0xfe   :  { %735 = vsyncpa [#allocation3 + $0x1], 1 }

</bundles_post_ra>
